<compile_context>
chip_gen: v5e
topology: v5e:2x2
jax: 0.10.0
libtpu: 0.0.40
codegen_flags: <defaults>
</compile_context>

<pallas_src>
import functools

import jax
import jax.numpy as jnp
from jax.experimental import pallas as pl
from jax.experimental.pallas import tpu as pltpu


LANE = 128     # TPU lane width; feature dims are padded to multiples of this.
SUBLANE = 8    # batch tiles must be sublane-aligned.
MAX_TB = 256   # cap on the batch tile (rows) for large batches.


def _round_up(n, m):
    return ((n + m - 1) // m) * m


def _pad2(a, rows, cols):
    return jnp.pad(a, ((0, rows - a.shape[0]), (0, cols - a.shape[1])))


def vae_kernel(x_ref, eps_ref,
               w1_ref, b1_ref,
               whead_ref, bhead_ref,
               w2_ref, b2_ref,
               w3_ref, b3_ref,
               xr_ref, musig_ref):
    lp = whead_ref.shape[1] // 2  # padded latent width (multiple of 128)

    x = x_ref[...]
    eps = eps_ref[...]

    # encoder: h = relu(x @ W1 + b1)
    h = jnp.dot(x, w1_ref[...], preferred_element_type=jnp.float32) + b1_ref[...]
    h = jnp.maximum(h, 0.0)

    # fused mu|sigma head: single MXU pass, lane-dense [TB, 2*Lp] result
    musig = (jnp.dot(h, whead_ref[...], preferred_element_type=jnp.float32)
             + bhead_ref[...])
    mu = musig[:, :lp]        # slice at a 128-lane boundary -> layout-cheap
    sigma = musig[:, lp:]

    # reparametrization: z = mu + eps * sigma  (padded lanes stay exactly 0)
    z = mu + eps * sigma

    # decoder: h2 = relu(z @ W2 + b2); x_recon = sigmoid(h2 @ W3 + b3)
    h2 = jnp.dot(z, w2_ref[...], preferred_element_type=jnp.float32) + b2_ref[...]
    h2 = jnp.maximum(h2, 0.0)
    logits = (jnp.dot(h2, w3_ref[...], preferred_element_type=jnp.float32)
              + b3_ref[...])

    xr_ref[...] = jax.nn.sigmoid(logits)
    musig_ref[...] = musig


def prepare_vae_params(params):
    """One-time (outside the hot path): zero-pad to 128-lane widths and fuse
    the mu/sigma heads into a single [Hp, 2*Lp] weight / [1, 2*Lp] bias."""
    D, H = params["w1"].shape
    L = params["w_mu"].shape[1]
    Dp, Hp, Lp = _round_up(D, LANE), _round_up(H, LANE), _round_up(L, LANE)

    padded = dict(
        w1=_pad2(params["w1"], Dp, Hp),
        b1=_pad2(params["b1"], 1, Hp),
        w_head=jnp.concatenate(
            [_pad2(params["w_mu"], Hp, Lp), _pad2(params["w_sigma"], Hp, Lp)],
            axis=1),
        b_head=jnp.concatenate(
            [_pad2(params["b_mu"], 1, Lp), _pad2(params["b_sigma"], 1, Lp)],
            axis=1),
        w2=_pad2(params["w2"], Lp, Hp),
        b2=_pad2(params["b2"], 1, Hp),
        w3=_pad2(params["w3"], Hp, Dp),
        b3=_pad2(params["b3"], 1, Dp),
    )
    return jax.device_put(padded)


@functools.partial(jax.jit, static_argnames=("single_buffer_weights",))
def vae_forward(x, eps, padded, single_buffer_weights=True):
    """x: [B, input_dim] f32, eps: [B, latent_dim] f32, padded from
    prepare_vae_params. Returns (x_reconstructed, mu, sigma) at logical sizes."""
    B, D = x.shape
    L = eps.shape[1]
    Dp, Hp = padded["w1"].shape
    Lp = padded["w2"].shape[0]

    # Batch tile: whole (8-aligned) batch in one grid step when small; 256-row
    # tiles otherwise so the MXU sees a tall LHS and per-step overhead
    # (~0.35 us) is amortized.
    tb = min(MAX_TB, _round_up(B, SUBLANE))
    Bp = _round_up(B, tb)
    n_tiles = Bp // tb

    # --- pad activations (fused into this jit; weights were pre-padded) ----
    x_p = _pad2(x, Bp, Dp)
    eps_p = _pad2(eps, Bp, Lp)

    # batch tiles move with the grid; weights/biases use a constant index_map
    # (stay resident) and, when supported, a single VMEM buffer.
    def batch_spec(cols):
        return pl.BlockSpec((tb, cols), lambda i: (i, 0))

    def resident(rows, cols):
        if single_buffer_weights:
            try:
                return pl.BlockSpec((rows, cols), lambda i: (0, 0),
                                    pipeline_mode=pl.Buffered(1))
            except TypeError:
                pass  # older BlockSpec without pipeline_mode kwarg
        return pl.BlockSpec((rows, cols), lambda i: (0, 0))

    in_specs = [
        batch_spec(Dp),            # x
        batch_spec(Lp),            # eps
        resident(Dp, Hp),          # w1
        resident(1, Hp),           # b1
        resident(Hp, 2 * Lp),      # w_head (mu|sigma)
        resident(1, 2 * Lp),       # b_head
        resident(Lp, Hp),          # w2
        resident(1, Hp),           # b2
        resident(Hp, Dp),          # w3
        resident(1, Dp),           # b3
    ]
    out_specs = [
        batch_spec(Dp),            # x_reconstructed (padded)
        batch_spec(2 * Lp),        # mu|sigma (padded, fused)
    ]
    out_shapes = (
        jax.ShapeDtypeStruct((Bp, Dp), jnp.float32),
        jax.ShapeDtypeStruct((Bp, 2 * Lp), jnp.float32),
    )

    # --- VMEM budget: weights x1 buffer, activations/outputs x2, kernel
    # intermediates, +25% headroom; clamp well under v7x's 64 MiB. ----------
    weight_bytes = 4 * (Dp * Hp + Hp + Hp * 2 * Lp + 2 * Lp
                        + Lp * Hp + Hp + Hp * Dp + Dp)
    act_bytes = 4 * 2 * tb * (Dp + Lp + Dp + 2 * Lp)        # double-buffered
    inter_bytes = 4 * tb * (Hp + 2 * Lp + Hp + Dp)          # h, musig, h2, logits
    vmem_bytes = int(1.25 * (weight_bytes + act_bytes + inter_bytes)) + (2 << 20)
    vmem_bytes = max(4 << 20, min(vmem_bytes, 48 << 20))

    flops = 2 * Bp * (Dp * Hp + Hp * 2 * Lp + Lp * Hp + Hp * Dp)
    bytes_accessed = 4 * (
        Bp * Dp + Bp * Lp                      # x, eps
        + Dp * Hp + Hp + Hp * 2 * Lp + 2 * Lp  # w1/b1, w_head/b_head
        + Lp * Hp + Hp + Hp * Dp + Dp          # w2/b2, w3/b3
        + Bp * Dp + Bp * 2 * Lp)               # outputs
    cost = pl.CostEstimate(flops=flops, transcendentals=Bp * Dp,
                           bytes_accessed=bytes_accessed)

    fn = pl.pallas_call(
        vae_kernel,
        out_shape=out_shapes,
        grid_spec=pltpu.PrefetchScalarGridSpec(
            num_scalar_prefetch=0,
            grid=(n_tiles,),
            in_specs=in_specs,
            out_specs=out_specs,
        ),
        compiler_params=pltpu.CompilerParams(
            dimension_semantics=("parallel",),
            vmem_limit_bytes=vmem_bytes,
        ),
        cost_estimate=cost,
    )
    xr_p, musig_p = fn(x_p, eps_p,
                       padded["w1"], padded["b1"],
                       padded["w_head"], padded["b_head"],
                       padded["w2"], padded["b2"],
                       padded["w3"], padded["b3"])

    # strip the padding back off (fused into this jit)
    x_rec = xr_p[:B, :D]
    mu = musig_p[:B, :L]
    sigma = musig_p[:B, Lp:Lp + L]
    return x_rec, mu, sigma


def init_params(key, input_dim, hidden_dim, latent_dim):
    """Deterministic synthetic params, stored as (in, out) weights + (1, out) bias."""
    ks = jax.random.split(key, 10)

    def lin(kw, kb, fan_in, fan_out):
        bound = 1.0 / jnp.sqrt(fan_in)
        w = jax.random.uniform(kw, (fan_in, fan_out), jnp.float32, -bound, bound)
        b = jax.random.uniform(kb, (1, fan_out), jnp.float32, -bound, bound)
        return w, b

    w1, b1 = lin(ks[0], ks[1], input_dim, hidden_dim)
    w_mu, b_mu = lin(ks[2], ks[3], hidden_dim, latent_dim)
    w_sigma, b_sigma = lin(ks[4], ks[5], hidden_dim, latent_dim)
    w2, b2 = lin(ks[6], ks[7], latent_dim, hidden_dim)
    w3, b3 = lin(ks[8], ks[9], hidden_dim, input_dim)
    return dict(w1=w1, b1=b1, w_mu=w_mu, b_mu=b_mu,
                w_sigma=w_sigma, b_sigma=b_sigma,
                w2=w2, b2=b2, w3=w3, b3=b3)


def vae_ref(x, eps, p):
    """Pure-JAX reference mirroring the PyTorch module (sigma emitted raw)."""
    h = jnp.maximum(x @ p["w1"] + p["b1"], 0.0)
    mu = h @ p["w_mu"] + p["b_mu"]
    sigma = h @ p["w_sigma"] + p["b_sigma"]
    z = mu + eps * sigma
    h2 = jnp.maximum(z @ p["w2"] + p["b2"], 0.0)
    xr = jax.nn.sigmoid(h2 @ p["w3"] + p["b3"])
    return xr, mu, sigma


if __name__ == "__main__":
    # Small logical shapes consistent with the module; feature dims are padded
    # to 128 lanes inside the wrapper.  With B=16 the whole batch runs as a
    # single 16-row grid step (no pipeline / megacore overhead, per review).
    B, INPUT_DIM, HIDDEN_DIM, LATENT_DIM = 16, 64, 32, 16

    key = jax.random.PRNGKey(0)
    k_x, k_eps, k_p = jax.random.split(key, 3)

    x = jax.random.normal(k_x, (B, INPUT_DIM), jnp.float32)
    # torch.randn_like(sigma) -> explicit deterministic reparametrization noise
    eps = jax.random.normal(k_eps, (B, LATENT_DIM), jnp.float32)
    params = init_params(k_p, INPUT_DIM, HIDDEN_DIM, LATENT_DIM)

    padded = prepare_vae_params(params)   # one-time padding + head fusion

    try:
        outs = vae_forward(x, eps, padded)
        outs = jax.block_until_ready(outs)
    except Exception:
        # Fallback if this JAX build rejects single-buffered resident weights.
        outs = vae_forward(x, eps, padded, single_buffer_weights=False)
        outs = jax.block_until_ready(outs)
    x_rec, mu, sigma = outs

    # correctness check against a pure-JAX reference (matches the PyTorch
    # module: sigma head is a plain Linear, no exp/softplus applied)
    x_rec_r, mu_r, sigma_r = vae_ref(x, eps, params)
    assert x_rec.shape == (B, INPUT_DIM) and mu.shape == (B, LATENT_DIM)
    assert sigma.shape == (B, LATENT_DIM)
    assert jnp.allclose(x_rec, x_rec_r, atol=1e-5, rtol=1e-5)
    assert jnp.allclose(mu, mu_r, atol=1e-5, rtol=1e-5)
    assert jnp.allclose(sigma, sigma_r, atol=1e-5, rtol=1e-5)

    print("KERNEL_OK")
</pallas_src>

<mosaic_0001>
module attributes {stable_mosaic.version = 11 : i64} {
  func.func @vae_kernel(%arg0: i32, %arg1: memref<16x128xf32, #tpu.memory_space<vmem>>, %arg2: memref<16x128xf32, #tpu.memory_space<vmem>>, %arg3: memref<128x128xf32, #tpu.memory_space<vmem>>, %arg4: memref<1x128xf32, #tpu.memory_space<vmem>>, %arg5: memref<128x256xf32, #tpu.memory_space<vmem>>, %arg6: memref<1x256xf32, #tpu.memory_space<vmem>>, %arg7: memref<128x128xf32, #tpu.memory_space<vmem>>, %arg8: memref<1x128xf32, #tpu.memory_space<vmem>>, %arg9: memref<128x128xf32, #tpu.memory_space<vmem>>, %arg10: memref<1x128xf32, #tpu.memory_space<vmem>>, %arg11: memref<16x128xf32, #tpu.memory_space<vmem>>, %arg12: memref<16x256xf32, #tpu.memory_space<vmem>>) attributes {dimension_semantics = [#tpu.dimension_semantics<parallel>], iteration_bounds = array<i64: 1>, scalar_prefetch = 0 : i64, scratch_operands = 0 : i64, tpu.core_type = #tpu.core_type<tc>, window_params = [{transform_indices = @transform_0, window_bounds = array<i64: 16, 128>}, {transform_indices = @transform_1, window_bounds = array<i64: 16, 128>}, {pipeline_mode = #tpu.pipeline_mode<synchronous>, transform_indices = @transform_2, window_bounds = array<i64: 128, 128>}, {pipeline_mode = #tpu.pipeline_mode<synchronous>, transform_indices = @transform_3, window_bounds = array<i64: 1, 128>}, {pipeline_mode = #tpu.pipeline_mode<synchronous>, transform_indices = @transform_4, window_bounds = array<i64: 128, 256>}, {pipeline_mode = #tpu.pipeline_mode<synchronous>, transform_indices = @transform_5, window_bounds = array<i64: 1, 256>}, {pipeline_mode = #tpu.pipeline_mode<synchronous>, transform_indices = @transform_6, window_bounds = array<i64: 128, 128>}, {pipeline_mode = #tpu.pipeline_mode<synchronous>, transform_indices = @transform_7, window_bounds = array<i64: 1, 128>}, {pipeline_mode = #tpu.pipeline_mode<synchronous>, transform_indices = @transform_8, window_bounds = array<i64: 128, 128>}, {pipeline_mode = #tpu.pipeline_mode<synchronous>, transform_indices = @transform_9, window_bounds = array<i64: 1, 128>}, {transform_indices = @transform_10, window_bounds = array<i64: 16, 128>}, {transform_indices = @transform_11, window_bounds = array<i64: 16, 256>}]} {
    %c0 = arith.constant 0 : index
    %c0_0 = arith.constant 0 : index
    %0 = vector.load %arg1[%c0, %c0_0] : memref<16x128xf32, #tpu.memory_space<vmem>>, vector<16x128xf32>
    %c0_1 = arith.constant 0 : index
    %c0_2 = arith.constant 0 : index
    %1 = vector.load %arg2[%c0_1, %c0_2] : memref<16x128xf32, #tpu.memory_space<vmem>>, vector<16x128xf32>
    %c0_3 = arith.constant 0 : index
    %c0_4 = arith.constant 0 : index
    %2 = vector.load %arg3[%c0_3, %c0_4] : memref<128x128xf32, #tpu.memory_space<vmem>>, vector<128x128xf32>
    %cst = arith.constant dense<0.000000e+00> : vector<16x128xf32>
    %3 = tpu.matmul %0, %2, %cst {dimension_numbers = #tpu.dot_dimension_numbers<[1], [0], [0], [1], [0, 0, 1, 1], [], []>} : vector<16x128xf32>, vector<128x128xf32>, vector<16x128xf32> -> vector<16x128xf32>
    %c0_5 = arith.constant 0 : index
    %c0_6 = arith.constant 0 : index
    %4 = vector.load %arg4[%c0_5, %c0_6] : memref<1x128xf32, #tpu.memory_space<vmem>>, vector<1x128xf32>
    %5 = vector.broadcast %4 : vector<1x128xf32> to vector<16x128xf32>
    %6 = arith.addf %3, %5 : vector<16x128xf32>
    %cst_7 = arith.constant 0.000000e+00 : f32
    %7 = vector.broadcast %cst_7 : f32 to vector<16x128xf32>
    %8 = arith.maximumf %6, %7 : vector<16x128xf32>
    %c0_8 = arith.constant 0 : index
    %c0_9 = arith.constant 0 : index
    %9 = vector.load %arg5[%c0_8, %c0_9] : memref<128x256xf32, #tpu.memory_space<vmem>>, vector<128x256xf32>
    %cst_10 = arith.constant dense<0.000000e+00> : vector<16x256xf32>
    %10 = tpu.matmul %8, %9, %cst_10 {dimension_numbers = #tpu.dot_dimension_numbers<[1], [0], [0], [1], [0, 0, 1, 1], [], []>} : vector<16x128xf32>, vector<128x256xf32>, vector<16x256xf32> -> vector<16x256xf32>
    %c0_11 = arith.constant 0 : index
    %c0_12 = arith.constant 0 : index
    %11 = vector.load %arg6[%c0_11, %c0_12] : memref<1x256xf32, #tpu.memory_space<vmem>>, vector<1x256xf32>
    %12 = vector.broadcast %11 : vector<1x256xf32> to vector<16x256xf32>
    %13 = arith.addf %10, %12 : vector<16x256xf32>
    %14 = vector.extract_strided_slice %13 {offsets = [0, 0], sizes = [16, 128], strides = [1, 1]} : vector<16x256xf32> to vector<16x128xf32>
    %15 = vector.extract_strided_slice %13 {offsets = [0, 128], sizes = [16, 128], strides = [1, 1]} : vector<16x256xf32> to vector<16x128xf32>
    %16 = arith.mulf %1, %15 : vector<16x128xf32>
    %17 = arith.addf %14, %16 : vector<16x128xf32>
    %c0_13 = arith.constant 0 : index
    %c0_14 = arith.constant 0 : index
    %18 = vector.load %arg7[%c0_13, %c0_14] : memref<128x128xf32, #tpu.memory_space<vmem>>, vector<128x128xf32>
    %cst_15 = arith.constant dense<0.000000e+00> : vector<16x128xf32>
    %19 = tpu.matmul %17, %18, %cst_15 {dimension_numbers = #tpu.dot_dimension_numbers<[1], [0], [0], [1], [0, 0, 1, 1], [], []>} : vector<16x128xf32>, vector<128x128xf32>, vector<16x128xf32> -> vector<16x128xf32>
    %c0_16 = arith.constant 0 : index
    %c0_17 = arith.constant 0 : index
    %20 = vector.load %arg8[%c0_16, %c0_17] : memref<1x128xf32, #tpu.memory_space<vmem>>, vector<1x128xf32>
    %21 = vector.broadcast %20 : vector<1x128xf32> to vector<16x128xf32>
    %22 = arith.addf %19, %21 : vector<16x128xf32>
    %cst_18 = arith.constant 0.000000e+00 : f32
    %23 = vector.broadcast %cst_18 : f32 to vector<16x128xf32>
    %24 = arith.maximumf %22, %23 : vector<16x128xf32>
    %c0_19 = arith.constant 0 : index
    %c0_20 = arith.constant 0 : index
    %25 = vector.load %arg9[%c0_19, %c0_20] : memref<128x128xf32, #tpu.memory_space<vmem>>, vector<128x128xf32>
    %cst_21 = arith.constant dense<0.000000e+00> : vector<16x128xf32>
    %26 = tpu.matmul %24, %25, %cst_21 {dimension_numbers = #tpu.dot_dimension_numbers<[1], [0], [0], [1], [0, 0, 1, 1], [], []>} : vector<16x128xf32>, vector<128x128xf32>, vector<16x128xf32> -> vector<16x128xf32>
    %c0_22 = arith.constant 0 : index
    %c0_23 = arith.constant 0 : index
    %27 = vector.load %arg10[%c0_22, %c0_23] : memref<1x128xf32, #tpu.memory_space<vmem>>, vector<1x128xf32>
    %28 = vector.broadcast %27 : vector<1x128xf32> to vector<16x128xf32>
    %29 = arith.addf %26, %28 : vector<16x128xf32>
    %30 = arith.negf %29 : vector<16x128xf32>
    %31 = math.exp %30 : vector<16x128xf32>
    %cst_24 = arith.constant 1.000000e+00 : f32
    %32 = vector.broadcast %cst_24 : f32 to vector<16x128xf32>
    %33 = arith.addf %32, %31 : vector<16x128xf32>
    %34 = arith.divf %32, %33 : vector<16x128xf32>
    %c0_25 = arith.constant 0 : index
    %c0_26 = arith.constant 0 : index
    %35 = vector.load %arg11[%c0_25, %c0_26] : memref<16x128xf32, #tpu.memory_space<vmem>>, vector<16x128xf32>
    tpu.vector_store %arg11[%c0_25, %c0_26], %34 {strides = array<i32>} : memref<16x128xf32, #tpu.memory_space<vmem>>, vector<16x128xf32>,
    %c0_27 = arith.constant 0 : index
    %c0_28 = arith.constant 0 : index
    %36 = vector.load %arg12[%c0_27, %c0_28] : memref<16x256xf32, #tpu.memory_space<vmem>>, vector<16x256xf32>
    tpu.vector_store %arg12[%c0_27, %c0_28], %13 {strides = array<i32>} : memref<16x256xf32, #tpu.memory_space<vmem>>, vector<16x256xf32>,
    return
  }
  func.func @transform_0(%arg0: i32) -> (i32, i32) {
    %c0_i32 = arith.constant 0 : i32
    %c0_i32_0 = arith.constant 0 : i32
    return %arg0, %c0_i32 : i32, i32
  }
  func.func @transform_1(%arg0: i32) -> (i32, i32) {
    %c0_i32 = arith.constant 0 : i32
    %c0_i32_0 = arith.constant 0 : i32
    return %arg0, %c0_i32 : i32, i32
  }
  func.func @transform_2(%arg0: i32) -> (i32, i32) {
    %c0_i32 = arith.constant 0 : i32
    %c0_i32_0 = arith.constant 0 : i32
    %c0_i32_1 = arith.constant 0 : i32
    return %c0_i32, %c0_i32_0 : i32, i32
  }
  func.func @transform_3(%arg0: i32) -> (i32, i32) {
    %c0_i32 = arith.constant 0 : i32
    %c0_i32_0 = arith.constant 0 : i32
    %c0_i32_1 = arith.constant 0 : i32
    return %c0_i32, %c0_i32_0 : i32, i32
  }
  func.func @transform_4(%arg0: i32) -> (i32, i32) {
    %c0_i32 = arith.constant 0 : i32
    %c0_i32_0 = arith.constant 0 : i32
    %c0_i32_1 = arith.constant 0 : i32
    return %c0_i32, %c0_i32_0 : i32, i32
  }
  func.func @transform_5(%arg0: i32) -> (i32, i32) {
    %c0_i32 = arith.constant 0 : i32
    %c0_i32_0 = arith.constant 0 : i32
    %c0_i32_1 = arith.constant 0 : i32
    return %c0_i32, %c0_i32_0 : i32, i32
  }
  func.func @transform_6(%arg0: i32) -> (i32, i32) {
    %c0_i32 = arith.constant 0 : i32
    %c0_i32_0 = arith.constant 0 : i32
    %c0_i32_1 = arith.constant 0 : i32
    return %c0_i32, %c0_i32_0 : i32, i32
  }
  func.func @transform_7(%arg0: i32) -> (i32, i32) {
    %c0_i32 = arith.constant 0 : i32
    %c0_i32_0 = arith.constant 0 : i32
    %c0_i32_1 = arith.constant 0 : i32
    return %c0_i32, %c0_i32_0 : i32, i32
  }
  func.func @transform_8(%arg0: i32) -> (i32, i32) {
    %c0_i32 = arith.constant 0 : i32
    %c0_i32_0 = arith.constant 0 : i32
    %c0_i32_1 = arith.constant 0 : i32
    return %c0_i32, %c0_i32_0 : i32, i32
  }
  func.func @transform_9(%arg0: i32) -> (i32, i32) {
    %c0_i32 = arith.constant 0 : i32
    %c0_i32_0 = arith.constant 0 : i32
    %c0_i32_1 = arith.constant 0 : i32
    return %c0_i32, %c0_i32_0 : i32, i32
  }
  func.func @transform_10(%arg0: i32) -> (i32, i32) {
    %c0_i32 = arith.constant 0 : i32
    %c0_i32_0 = arith.constant 0 : i32
    return %arg0, %c0_i32 : i32, i32
  }
  func.func @transform_11(%arg0: i32) -> (i32, i32) {
    %c0_i32 = arith.constant 0 : i32
    %c0_i32_0 = arith.constant 0 : i32
    return %arg0, %c0_i32 : i32, i32
  }
}

module attributes {stable_mosaic.version = 11 : i64} {
  func.func @vae_kernel(%arg0: i32, %arg1: memref<16x128xf32, #tpu.memory_space<vmem>>, %arg2: memref<16x128xf32, #tpu.memory_space<vmem>>, %arg3: memref<128x128xf32, #tpu.memory_space<vmem>>, %arg4: memref<1x128xf32, #tpu.memory_space<vmem>>, %arg5: memref<128x256xf32, #tpu.memory_space<vmem>>, %arg6: memref<1x256xf32, #tpu.memory_space<vmem>>, %arg7: memref<128x128xf32, #tpu.memory_space<vmem>>, %arg8: memref<1x128xf32, #tpu.memory_space<vmem>>, %arg9: memref<128x128xf32, #tpu.memory_space<vmem>>, %arg10: memref<1x128xf32, #tpu.memory_space<vmem>>, %arg11: memref<16x128xf32, #tpu.memory_space<vmem>>, %arg12: memref<16x256xf32, #tpu.memory_space<vmem>>) attributes {dimension_semantics = [#tpu.dimension_semantics<parallel>], iteration_bounds = array<i64: 1>, scalar_prefetch = 0 : i64, scratch_operands = 0 : i64, tpu.core_type = #tpu.core_type<tc>, window_params = [{transform_indices = @transform_0, window_bounds = array<i64: 16, 128>}, {transform_indices = @transform_1, window_bounds = array<i64: 16, 128>}, {pipeline_mode = #tpu.pipeline_mode<synchronous>, transform_indices = @transform_2, window_bounds = array<i64: 128, 128>}, {pipeline_mode = #tpu.pipeline_mode<synchronous>, transform_indices = @transform_3, window_bounds = array<i64: 1, 128>}, {pipeline_mode = #tpu.pipeline_mode<synchronous>, transform_indices = @transform_4, window_bounds = array<i64: 128, 256>}, {pipeline_mode = #tpu.pipeline_mode<synchronous>, transform_indices = @transform_5, window_bounds = array<i64: 1, 256>}, {pipeline_mode = #tpu.pipeline_mode<synchronous>, transform_indices = @transform_6, window_bounds = array<i64: 128, 128>}, {pipeline_mode = #tpu.pipeline_mode<synchronous>, transform_indices = @transform_7, window_bounds = array<i64: 1, 128>}, {pipeline_mode = #tpu.pipeline_mode<synchronous>, transform_indices = @transform_8, window_bounds = array<i64: 128, 128>}, {pipeline_mode = #tpu.pipeline_mode<synchronous>, transform_indices = @transform_9, window_bounds = array<i64: 1, 128>}, {transform_indices = @transform_10, window_bounds = array<i64: 16, 128>}, {transform_indices = @transform_11, window_bounds = array<i64: 16, 256>}]} {
    %c0 = arith.constant 0 : index
    %c0_0 = arith.constant 0 : index
    %0 = vector.load %arg1[%c0, %c0_0] : memref<16x128xf32, #tpu.memory_space<vmem>>, vector<16x128xf32>
    %c0_1 = arith.constant 0 : index
    %c0_2 = arith.constant 0 : index
    %1 = vector.load %arg2[%c0_1, %c0_2] : memref<16x128xf32, #tpu.memory_space<vmem>>, vector<16x128xf32>
    %c0_3 = arith.constant 0 : index
    %c0_4 = arith.constant 0 : index
    %2 = vector.load %arg3[%c0_3, %c0_4] : memref<128x128xf32, #tpu.memory_space<vmem>>, vector<128x128xf32>
    %cst = arith.constant dense<0.000000e+00> : vector<16x128xf32>
    %3 = tpu.matmul %0, %2, %cst {dimension_numbers = #tpu.dot_dimension_numbers<[1], [0], [0], [1], [0, 0, 1, 1], [], []>} : vector<16x128xf32>, vector<128x128xf32>, vector<16x128xf32> -> vector<16x128xf32>
    %c0_5 = arith.constant 0 : index
    %c0_6 = arith.constant 0 : index
    %4 = vector.load %arg4[%c0_5, %c0_6] : memref<1x128xf32, #tpu.memory_space<vmem>>, vector<1x128xf32>
    %5 = vector.broadcast %4 : vector<1x128xf32> to vector<16x128xf32>
    %6 = arith.addf %3, %5 : vector<16x128xf32>
    %cst_7 = arith.constant 0.000000e+00 : f32
    %7 = vector.broadcast %cst_7 : f32 to vector<16x128xf32>
    %8 = arith.maximumf %6, %7 : vector<16x128xf32>
    %c0_8 = arith.constant 0 : index
    %c0_9 = arith.constant 0 : index
    %9 = vector.load %arg5[%c0_8, %c0_9] : memref<128x256xf32, #tpu.memory_space<vmem>>, vector<128x256xf32>
    %cst_10 = arith.constant dense<0.000000e+00> : vector<16x256xf32>
    %10 = tpu.matmul %8, %9, %cst_10 {dimension_numbers = #tpu.dot_dimension_numbers<[1], [0], [0], [1], [0, 0, 1, 1], [], []>} : vector<16x128xf32>, vector<128x256xf32>, vector<16x256xf32> -> vector<16x256xf32>
    %c0_11 = arith.constant 0 : index
    %c0_12 = arith.constant 0 : index
    %11 = vector.load %arg6[%c0_11, %c0_12] : memref<1x256xf32, #tpu.memory_space<vmem>>, vector<1x256xf32>
    %12 = vector.broadcast %11 : vector<1x256xf32> to vector<16x256xf32>
    %13 = arith.addf %10, %12 : vector<16x256xf32>
    %14 = vector.extract_strided_slice %13 {offsets = [0, 0], sizes = [16, 128], strides = [1, 1]} : vector<16x256xf32> to vector<16x128xf32>
    %15 = vector.extract_strided_slice %13 {offsets = [0, 128], sizes = [16, 128], strides = [1, 1]} : vector<16x256xf32> to vector<16x128xf32>
    %16 = arith.mulf %1, %15 : vector<16x128xf32>
    %17 = arith.addf %14, %16 : vector<16x128xf32>
    %c0_13 = arith.constant 0 : index
    %c0_14 = arith.constant 0 : index
    %18 = vector.load %arg7[%c0_13, %c0_14] : memref<128x128xf32, #tpu.memory_space<vmem>>, vector<128x128xf32>
    %cst_15 = arith.constant dense<0.000000e+00> : vector<16x128xf32>
    %19 = tpu.matmul %17, %18, %cst_15 {dimension_numbers = #tpu.dot_dimension_numbers<[1], [0], [0], [1], [0, 0, 1, 1], [], []>} : vector<16x128xf32>, vector<128x128xf32>, vector<16x128xf32> -> vector<16x128xf32>
    %c0_16 = arith.constant 0 : index
    %c0_17 = arith.constant 0 : index
    %20 = vector.load %arg8[%c0_16, %c0_17] : memref<1x128xf32, #tpu.memory_space<vmem>>, vector<1x128xf32>
    %21 = vector.broadcast %20 : vector<1x128xf32> to vector<16x128xf32>
    %22 = arith.addf %19, %21 : vector<16x128xf32>
    %cst_18 = arith.constant 0.000000e+00 : f32
    %23 = vector.broadcast %cst_18 : f32 to vector<16x128xf32>
    %24 = arith.maximumf %22, %23 : vector<16x128xf32>
    %c0_19 = arith.constant 0 : index
    %c0_20 = arith.constant 0 : index
    %25 = vector.load %arg9[%c0_19, %c0_20] : memref<128x128xf32, #tpu.memory_space<vmem>>, vector<128x128xf32>
    %cst_21 = arith.constant dense<0.000000e+00> : vector<16x128xf32>
    %26 = tpu.matmul %24, %25, %cst_21 {dimension_numbers = #tpu.dot_dimension_numbers<[1], [0], [0], [1], [0, 0, 1, 1], [], []>} : vector<16x128xf32>, vector<128x128xf32>, vector<16x128xf32> -> vector<16x128xf32>
    %c0_22 = arith.constant 0 : index
    %c0_23 = arith.constant 0 : index
    %27 = vector.load %arg10[%c0_22, %c0_23] : memref<1x128xf32, #tpu.memory_space<vmem>>, vector<1x128xf32>
    %28 = vector.broadcast %27 : vector<1x128xf32> to vector<16x128xf32>
    %29 = arith.addf %26, %28 : vector<16x128xf32>
    %30 = arith.negf %29 : vector<16x128xf32>
    %31 = math.exp %30 : vector<16x128xf32>
    %cst_24 = arith.constant 1.000000e+00 : f32
    %32 = vector.broadcast %cst_24 : f32 to vector<16x128xf32>
    %33 = arith.addf %32, %31 : vector<16x128xf32>
    %34 = arith.divf %32, %33 : vector<16x128xf32>
    %c0_25 = arith.constant 0 : index
    %c0_26 = arith.constant 0 : index
    %35 = vector.load %arg11[%c0_25, %c0_26] : memref<16x128xf32, #tpu.memory_space<vmem>>, vector<16x128xf32>
    tpu.vector_store %arg11[%c0_25, %c0_26], %34 {strides = array<i32>} : memref<16x128xf32, #tpu.memory_space<vmem>>, vector<16x128xf32>,
    %c0_27 = arith.constant 0 : index
    %c0_28 = arith.constant 0 : index
    %36 = vector.load %arg12[%c0_27, %c0_28] : memref<16x256xf32, #tpu.memory_space<vmem>>, vector<16x256xf32>
    tpu.vector_store %arg12[%c0_27, %c0_28], %13 {strides = array<i32>} : memref<16x256xf32, #tpu.memory_space<vmem>>, vector<16x256xf32>,
    return
  }
  func.func @transform_0(%arg0: i32) -> (i32, i32) {
    %c0_i32 = arith.constant 0 : i32
    %c0_i32_0 = arith.constant 0 : i32
    return %arg0, %c0_i32 : i32, i32
  }
  func.func @transform_1(%arg0: i32) -> (i32, i32) {
    %c0_i32 = arith.constant 0 : i32
    %c0_i32_0 = arith.constant 0 : i32
    return %arg0, %c0_i32 : i32, i32
  }
  func.func @transform_2(%arg0: i32) -> (i32, i32) {
    %c0_i32 = arith.constant 0 : i32
    %c0_i32_0 = arith.constant 0 : i32
    %c0_i32_1 = arith.constant 0 : i32
    return %c0_i32, %c0_i32_0 : i32, i32
  }
  func.func @transform_3(%arg0: i32) -> (i32, i32) {
    %c0_i32 = arith.constant 0 : i32
    %c0_i32_0 = arith.constant 0 : i32
    %c0_i32_1 = arith.constant 0 : i32
    return %c0_i32, %c0_i32_0 : i32, i32
  }
  func.func @transform_4(%arg0: i32) -> (i32, i32) {
    %c0_i32 = arith.constant 0 : i32
    %c0_i32_0 = arith.constant 0 : i32
    %c0_i32_1 = arith.constant 0 : i32
    return %c0_i32, %c0_i32_0 : i32, i32
  }
  func.func @transform_5(%arg0: i32) -> (i32, i32) {
    %c0_i32 = arith.constant 0 : i32
    %c0_i32_0 = arith.constant 0 : i32
    %c0_i32_1 = arith.constant 0 : i32
    return %c0_i32, %c0_i32_0 : i32, i32
  }
  func.func @transform_6(%arg0: i32) -> (i32, i32) {
    %c0_i32 = arith.constant 0 : i32
    %c0_i32_0 = arith.constant 0 : i32
    %c0_i32_1 = arith.constant 0 : i32
    return %c0_i32, %c0_i32_0 : i32, i32
  }
  func.func @transform_7(%arg0: i32) -> (i32, i32) {
    %c0_i32 = arith.constant 0 : i32
    %c0_i32_0 = arith.constant 0 : i32
    %c0_i32_1 = arith.constant 0 : i32
    return %c0_i32, %c0_i32_0 : i32, i32
  }
  func.func @transform_8(%arg0: i32) -> (i32, i32) {
    %c0_i32 = arith.constant 0 : i32
    %c0_i32_0 = arith.constant 0 : i32
    %c0_i32_1 = arith.constant 0 : i32
    return %c0_i32, %c0_i32_0 : i32, i32
  }
  func.func @transform_9(%arg0: i32) -> (i32, i32) {
    %c0_i32 = arith.constant 0 : i32
    %c0_i32_0 = arith.constant 0 : i32
    %c0_i32_1 = arith.constant 0 : i32
    return %c0_i32, %c0_i32_0 : i32, i32
  }
  func.func @transform_10(%arg0: i32) -> (i32, i32) {
    %c0_i32 = arith.constant 0 : i32
    %c0_i32_0 = arith.constant 0 : i32
    return %arg0, %c0_i32 : i32, i32
  }
  func.func @transform_11(%arg0: i32) -> (i32, i32) {
    %c0_i32 = arith.constant 0 : i32
    %c0_i32_0 = arith.constant 0 : i32
    return %arg0, %c0_i32 : i32, i32
  }
}

</mosaic_0001>

<bundles_post_ra>
// kernel: vae_forward.1
= control target key start
LH: loop header
LB: loop body
LE: loop exit
PB: predicated region body
PF: predicated region fallthrough
CT: control target
= control target key end

     0   :  { %17 = vsyncpa [#allocation3], 0  ;;  %s693_s0 = inlined_call_operand.vmem [shape: f32[16,128], index: 0, kind: input, shape index: {}]   ;;  %s694_s1 = inlined_call_operand.vmem [shape: f32[16,128], index: 1, kind: input, shape index: {}]   ;;  %s695_s2 = inlined_call_operand.hbm [shape: f32[128,128], index: 2, kind: input, shape index: {}]   ;;  %s696_s3 = inlined_call_operand.vmem [shape: f32[1,128], index: 3, kind: input, shape index: {}]   ;;  %s697_s4 = inlined_call_operand.hbm [shape: f32[128,256], index: 4, kind: input, shape index: {}]   ;;  %s698_s5 = inlined_call_operand.vmem [shape: f32[1,256], index: 5, kind: input, shape index: {}]   ;;  %s699_s6 = inlined_call_operand.hbm [shape: f32[128,128], index: 6, kind: input, shape index: {}]   ;;  %s700_s7 = inlined_call_operand.vmem [shape: f32[1,128], index: 7, kind: input, shape index: {}]   ;;  %s701_s8 = inlined_call_operand.hbm [shape: f32[128,128], index: 8, kind: input, shape index: {}]   ;;  %s702_s9 = inlined_call_operand.vmem [shape: f32[1,128], index: 9, kind: input, shape index: {}]   ;;  %s703_s10 = inlined_call_operand.hbm [shape: f32[16,128], index: 10, kind: output, shape index: {0}]   ;;  %s704_s11 = inlined_call_operand.vmem [shape: f32[16,256], index: 11, kind: output, shape index: {1}]  }
   0x1   :  { %18 = vsyncpa [#allocation6], 0 }
   0x2   :  { %19 = vsyncpa [#allocation9], 0  ;;  %s44_s19 = sshll.u32 %s697_s4, 4  ;;  %s45_s19 = int_to_ptr.hbm [resolvable:$true] %s44_s19 }
   0x3   :  { %20 = vsyncpa [#allocation4], 0  ;;  %s561_s20 = smov [#allocation5]   ;;  %s29_s24 = sshll.u32 %s695_s2, 4  ;;  %s30_s24 = int_to_ptr.hbm [resolvable:$true] %s29_s24 }
   0x4   :  { %s46_s21 = sshll.u32 %s561_s20, 4  ;;  %s562_s25 = smov 256   ;;  %s47_s21 = int_to_ptr.vmem [resolvable:$true] %s46_s21 }
   0x5   :  { %s563_s26 = smov 16   ;;  %s564_s27 = smov [#allocation2]  }
   0x6   :  { %52 = dma.hbm_to_vmem [thread:$0]  %s45_s19, 4096, %s47_s21, [#allocation6], %s562_s25, %s562_s25, %s563_s26  }
   0x7   :  { %s31_s28 = sshll.u32 %s564_s27, 4  ;;  %s565_s29 = smov 128   ;;  %s32_s28 = int_to_ptr.vmem [resolvable:$true] %s31_s28 }
   0x8   :  { %s566_s30 = smov 8   ;;  %s59_s13 = sshll.u32 %s699_s6, 4  ;;  %s60_s13 = int_to_ptr.hbm [resolvable:$true] %s59_s13 }
   0x9   :  { %37 = dma.hbm_to_vmem [thread:$0]  %s30_s24, 2048, %s32_s28, [#allocation3], %s565_s29, %s565_s29, %s566_s30  }
   0xa   :  { %s567_s14 = smov [#allocation7]   ;;  %s74_s17 = sshll.u32 %s701_s8, 4  ;;  %s75_s17 = int_to_ptr.hbm [resolvable:$true] %s74_s17 }
   0xb   :  { %s61_s2 = sshll.u32 %s567_s14, 4  ;;  %s568_s18 = smov [#allocation8]   ;;  %s62_s2 = int_to_ptr.vmem [resolvable:$true] %s61_s2 }
   0xc   :  { %67 = dma.hbm_to_vmem [thread:$0]  %s60_s13, 2048, %s62_s2, [#allocation6], %s565_s29, %s565_s29, %s566_s30  }
   0xd   :  { %s76_s19 = sshll.u32 %s568_s18, 4  ;;  %s77_s19 = int_to_ptr.vmem [resolvable:$true] %s76_s19 }
   0xe   :  { %82 = dma.hbm_to_vmem [thread:$0]  %s75_s17, 2048, %s77_s19, [#allocation9], %s565_s29, %s565_s29, %s566_s30  }
   0xf   :  { %553 = dma.done.wait [#allocation3], 2048  }
  0x10   :  { %554 = vsyncadd [#allocation3], 4294965248 }
  0x11   :  { %555 = dma.done.wait [#allocation6], 6144  }
  0x12   :  { %556 = vsyncadd [#allocation6], 4294961152 }
  0x13   :  { %557 = dma.done.wait [#allocation9], 2048  }
  0x14   :  { %558 = vsyncadd [#allocation9], 4294965248  ;;  %v120_v0 = vld [vmem:[#allocation2 + $0x78] sm:$0xff]  ;;  %v119_v1 = vld [vmem:[#allocation2 + $0x70] sm:$0xff]  ;;  %s376_s6 = sshll.u32 %s703_s10, 4  ;;  %s377_s6 = int_to_ptr.hbm [resolvable:$true] %s376_s6 }
  0x15   :  { %125 = vmatpush.msra.mxu0 %v120_v0  ;;  %v118_v2 = vld [vmem:[#allocation2 + $0x68] sm:$0xff]  ;;  %v117_v3 = vld [vmem:[#allocation2 + $0x60] sm:$0xff]  ;;  %v116_v4 = vld [vmem:[#allocation2 + $0x58] sm:$0xff] }
  0x16   :  { %v115_v5 = vld [vmem:[#allocation2 + $0x50] sm:$0xff]  ;;  %v181_v7 = vld [vmem:[#allocation5 + $0xf8] sm:$0xff]  ;;  %v178_v8 = vld [vmem:[#allocation5 + $0xe0] sm:$0xff] }
  0x17   :  { %126 = vmatpush.msra.mxu0 %v119_v1  ;;  %v180_v6 = vld [vmem:[#allocation5 + $0xf0] sm:$0xff]  ;;  %v179_v9 = vld [vmem:[#allocation5 + $0xe8] sm:$0xff]  ;;  %211 = vmatpush.msra.mxu2 %v181_v7  ;;  %v177_v12 = vld [vmem:[#allocation5 + $0xd8] sm:$0xff] }
  0x18   :  { %188 = vmatpush.msra.mxu1 %v180_v6  ;;  %v114_v10 = vld [vmem:[#allocation2 + $0x48] sm:$0xff]  ;;  %v176_v11 = vld [vmem:[#allocation5 + $0xd0] sm:$0xff]  ;;  %v113_v13 = vld [vmem:[#allocation2 + $0x40] sm:$0xff] }
  0x19   :  { %127 = vmatpush.msra.mxu0 %v118_v2  ;;  %212 = vmatpush.msra.mxu2 %v179_v9  ;;  %v174_v14 = vld [vmem:[#allocation5 + $0xc0] sm:$0xff]  ;;  %v175_v15 = vld [vmem:[#allocation5 + $0xc8] sm:$0xff]  ;;  %v112_v16 = vld [vmem:[#allocation2 + $0x38] sm:$0xff] }
  0x1a   :  { %189 = vmatpush.msra.mxu1 %v178_v8  ;;  %v172_v17 = vld [vmem:[#allocation5 + $0xb0] sm:$0xff]  ;;  %v173_v18 = vld [vmem:[#allocation5 + $0xb8] sm:$0xff]  ;;  %v170_v20 = vld [vmem:[#allocation5 + $0xa0] sm:$0xff] }
  0x1b   :  { %128 = vmatpush.msra.mxu0 %v117_v3  ;;  %213 = vmatpush.msra.mxu2 %v177_v12  ;;  %v111_v19 = vld [vmem:[#allocation2 + $0x30] sm:$0xff]  ;;  %v171_v21 = vld [vmem:[#allocation5 + $0xa8] sm:$0xff]  ;;  %v169_v24 = vld [vmem:[#allocation5 + $0x98] sm:$0xff] }
  0x1c   :  { %190 = vmatpush.msra.mxu1 %v176_v11  ;;  %v110_v22 = vld [vmem:[#allocation2 + $0x28] sm:$0xff]  ;;  %v168_v23 = vld [vmem:[#allocation5 + $0x90] sm:$0xff]  ;;  %v109_v25 = vld [vmem:[#allocation2 + $0x20] sm:$0xff] }
  0x1d   :  { %129 = vmatpush.msra.mxu0 %v116_v4  ;;  %214 = vmatpush.msra.mxu2 %v175_v15  ;;  %v166_v26 = vld [vmem:[#allocation5 + $0x80] sm:$0xff]  ;;  %v167_v27 = vld [vmem:[#allocation5 + $0x88] sm:$0xff]  ;;  %v108_v28 = vld [vmem:[#allocation2 + $0x18] sm:$0xff] }
  0x1e   :  { %191 = vmatpush.msra.mxu1 %v174_v14  ;;  %v164_v29 = vld [vmem:[#allocation5 + $0x70] sm:$0xff]  ;;  %v165_v30 = vld [vmem:[#allocation5 + $0x78] sm:$0xff]  ;;  %v162_v32 = vld [vmem:[#allocation5 + $0x60] sm:$0xff] }
  0x1f   :  { %130 = vmatpush.msra.mxu0 %v115_v5  ;;  %215 = vmatpush.msra.mxu2 %v173_v18  ;;  %v107_v31 = vld [vmem:[#allocation2 + $0x10] sm:$0xff]  ;;  %v163_v33 = vld [vmem:[#allocation5 + $0x68] sm:$0xff]  ;;  %v161_v36 = vld [vmem:[#allocation5 + $0x58] sm:$0xff] }
  0x20   :  { %192 = vmatpush.msra.mxu1 %v172_v17  ;;  %v106_v34 = vld [vmem:[#allocation2 + $0x8] sm:$0xff]  ;;  %v160_v35 = vld [vmem:[#allocation5 + $0x50] sm:$0xff]  ;;  %v105_v37 = vld [vmem:[#allocation2] sm:$0xff] }
  0x21   :  { %131 = vmatpush.msra.mxu0 %v114_v10  ;;  %216 = vmatpush.msra.mxu2 %v171_v21  ;;  %v158_v38 = vld [vmem:[#allocation5 + $0x40] sm:$0xff]  ;;  %v159_v40 = vld [vmem:[#allocation5 + $0x48] sm:$0xff]  ;;  %v156_v41 = vld [vmem:[#allocation5 + $0x30] sm:$0xff] }
  0x22   :  { %193 = vmatpush.msra.mxu1 %v170_v20  ;;  %v101_v39 = vld [vmem:[%s693_s0] sm:$0xff]  ;;  %v157_v42 = vld [vmem:[#allocation5 + $0x38] sm:$0xff]  ;;  %v102_v43 = vld [vmem:[%s693_s0 + $0x8] sm:$0xff] }
  0x23   :  { %132 = vmatpush.msra.mxu0 %v113_v13  ;;  %217 = vmatpush.msra.mxu2 %v169_v24  ;;  %v154_v44 = vld [vmem:[#allocation5 + $0x20] sm:$0xff]  ;;  %v155_v45 = vld [vmem:[#allocation5 + $0x28] sm:$0xff]  ;;  %v152_v46 = vld [vmem:[#allocation5 + $0x10] sm:$0xff] }
  0x24   :  { %194 = vmatpush.msra.mxu1 %v168_v23  ;;  %v153_v47 = vld [vmem:[#allocation5 + $0x18] sm:$0xff]  ;;  %v150_v48 = vld [vmem:[#allocation5] sm:$0xff]  ;;  %v151_v49 = vld [vmem:[#allocation5 + $0x8] sm:$0xff] }
  0x25   :  { %133 = vmatpush.msra.mxu0 %v112_v16  ;;  %218 = vmatpush.msra.mxu2 %v167_v27  ;;  %v253_v50 = vld [vmem:[#allocation7 + $0x78] sm:$0xff]  ;;  %v252_v51 = vld [vmem:[#allocation7 + $0x70] sm:$0xff]  ;;  %v251_v52 = vld [vmem:[#allocation7 + $0x68] sm:$0xff] }
  0x26   :  { %195 = vmatpush.msra.mxu1 %v166_v26  ;;  %258 = vmatpush.msra.mxu3 %v253_v50  ;;  %v250_v53 = vld [vmem:[#allocation7 + $0x60] sm:$0xff]  ;;  %v249_v54 = vld [vmem:[#allocation7 + $0x58] sm:$0xff]  ;;  %v248_v55 = vld [vmem:[#allocation7 + $0x50] sm:$0xff] }
  0x27   :  { %134 = vmatpush.msra.mxu0 %v111_v19  ;;  %219 = vmatpush.msra.mxu2 %v165_v30  ;;  %v247_v56 = vld [vmem:[#allocation7 + $0x48] sm:$0xff]  ;;  %v246_v57 = vld [vmem:[#allocation7 + $0x40] sm:$0xff]  ;;  %v245_v58 = vld [vmem:[#allocation7 + $0x38] sm:$0xff] }
  0x28   :  { %196 = vmatpush.msra.mxu1 %v164_v29  ;;  %259 = vmatpush.msra.mxu3 %v252_v51  ;;  %v422_v59 = vld [vmem:[%s696_s3] ss:$0 sm:$0xff]  ;;  %v244_v2 = vld [vmem:[#allocation7 + $0x30] sm:$0xff]  ;;  %v243_v3 = vld [vmem:[#allocation7 + $0x28] sm:$0xff] }
  0x29   :  { %135 = vmatpush.msra.mxu0 %v110_v22  ;;  %220 = vmatpush.msra.mxu2 %v163_v33  ;;  %v242_v4 = vld [vmem:[#allocation7 + $0x20] sm:$0xff]  ;;  %v241_v5 = vld [vmem:[#allocation7 + $0x18] sm:$0xff]  ;;  %v240_v6 = vld [vmem:[#allocation7 + $0x10] sm:$0xff] }
  0x2a   :  { %197 = vmatpush.msra.mxu1 %v162_v32  ;;  %260 = vmatpush.msra.mxu3 %v251_v52  ;;  %v239_v7 = vld [vmem:[#allocation7 + $0x8] sm:$0xff]  ;;  %v238_v8 = vld [vmem:[#allocation7] sm:$0xff]  ;;  %v298_v9 = vld [vmem:[#allocation8 + $0x78] sm:$0xff] }
  0x2b   :  { %136 = vmatpush.msra.mxu0 %v109_v25  ;;  %221 = vmatpush.msra.mxu2 %v161_v36  ;;  %v297_v10 = vld [vmem:[#allocation8 + $0x70] sm:$0xff]  ;;  %v296_v11 = vld [vmem:[#allocation8 + $0x68] sm:$0xff]  ;;  %v295_v12 = vld [vmem:[#allocation8 + $0x60] sm:$0xff] }
  0x2c   :  { %198 = vmatpush.msra.mxu1 %v160_v35  ;;  %261 = vmatpush.msra.mxu3 %v250_v53  ;;  %v182_v13 = vld [vmem:[%s698_s5] sm:$0x3]  ;;  %v294_v14 = vld [vmem:[#allocation8 + $0x58] sm:$0xff]  ;;  %v293_v16 = vld [vmem:[#allocation8 + $0x50] sm:$0xff] }
  0x2d   :  { %137 = vmatpush.msra.mxu0 %v108_v28  ;;  %222 = vmatpush.msra.mxu2 %v159_v40  ;;  %v184_v15 = vperm.slane %v182_v13, 0  ;;  %v292_v17 = vld [vmem:[#allocation8 + $0x48] sm:$0xff]  ;;  %v291_v20 = vld [vmem:[#allocation8 + $0x40] sm:$0xff]  ;;  %v185_v21 = vperm.slane %v182_v13, 1  ;;  %v290_v22 = vld [vmem:[#allocation8 + $0x38] sm:$0xff] }
  0x2e   :  { %199 = vmatpush.msra.mxu1 %v158_v38  ;;  %262 = vmatpush.msra.mxu3 %v249_v54  ;;  %v289_v23 = vld [vmem:[#allocation8 + $0x30] sm:$0xff]  ;;  %v103_v24 = vld [vmem:[%s694_s1] sm:$0xff]  ;;  %v288_v27 = vld [vmem:[#allocation8 + $0x28] sm:$0xff] }
  0x2f   :  { %138 = vmatpush.msra.mxu0 %v107_v31  ;;  %223 = vmatpush.msra.mxu2 %v157_v42  ;;  %v287_v31 = vld [vmem:[#allocation8 + $0x20] sm:$0xff]  ;;  %v286_v33 = vld [vmem:[#allocation8 + $0x18] sm:$0xff]  ;;  %v284_v40 = vld [vmem:[#allocation8 + $0x8] sm:$0xff] }
  0x30   :  { %200 = vmatpush.msra.mxu1 %v156_v41  ;;  %263 = vmatpush.msra.mxu3 %v248_v55  ;;  %v283_v41 = vld [vmem:[#allocation8] sm:$0xff] }
  0x31   :  { %139 = vmatpush.msra.mxu0 %v106_v34  ;;  %224 = vmatpush.msra.mxu2 %v155_v45  ;;  %v104_v34 = vld [vmem:[%s694_s1 + $0x8] sm:$0xff]  ;;  %v423_v42 = vld [vmem:[%s700_s7] ss:$0 sm:$0xff]  ;;  %s569_s7 = smov [#allocation10]  }
  0x32   :  { %201 = vmatpush.msra.mxu1 %v154_v44  ;;  %264 = vmatpush.msra.mxu3 %v247_v56 }
  0x33   :  { %140 = vmatpush.msra.mxu0 %v105_v37  ;;  %225 = vmatpush.msra.mxu2 %v153_v47 }
  0x34   :  { %141 = vmatmul.f32.vlgmr.msra.gmra.mxu0 %v101_v39  ;;  %202 = vmatpush.msra.mxu1 %v152_v46  ;;  %v285_v39 = vld [vmem:[#allocation8 + $0x10] sm:$0xff] }
  0x35   :  { %226 = vmatpush.msra.mxu2 %v151_v49  ;;  %265 = vmatpush.msra.mxu3 %v246_v57  ;;  %v424_v49 = vld [vmem:[%s702_s9] ss:$0 sm:$0xff]  ;;  %s374_s9 = sshll.u32 %s569_s7, 4  ;;  %s375_s9 = int_to_ptr.vmem [resolvable:$true] %s374_s9 }
  0x36   :  { %203 = vmatpush.msra.mxu1 %v150_v48  ;;  %303 = vmatpush.msrb.mxu0 %v298_v9 }
  0x37   :  { %266 = vmatpush.msra.mxu3 %v245_v58 }
  0x38   :  { %397 = vmatpush.msrb.mxu1 %v298_v9  ;;  %304 = vmatpush.msrb.mxu0 %v297_v10 }
  0x39   :  { %267 = vmatpush.msra.mxu3 %v244_v2 }
  0x3a   :  { %398 = vmatpush.msrb.mxu1 %v297_v10  ;;  %305 = vmatpush.msrb.mxu0 %v296_v11 }
  0x3b   :  { %268 = vmatpush.msra.mxu3 %v243_v3 }
  0x3c   :  { %144 = vmatmul.f32.gmra.mxu0 %v102_v43  ;;  %399 = vmatpush.msrb.mxu1 %v296_v11 }
  0x3d   :  { %269 = vmatpush.msra.mxu3 %v242_v4  ;;  %306 = vmatpush.msrb.mxu0 %v295_v12 }
  0x3e   :  { %400 = vmatpush.msrb.mxu1 %v295_v12 }
  0x3f   :  { %270 = vmatpush.msra.mxu3 %v241_v5  ;;  %307 = vmatpush.msrb.mxu0 %v294_v14 }
  0x40   :  { %401 = vmatpush.msrb.mxu1 %v294_v14 }
  0x41   :  { %271 = vmatpush.msra.mxu3 %v240_v6  ;;  %308 = vmatpush.msrb.mxu0 %v293_v16 }
  0x42   :  { %402 = vmatpush.msrb.mxu1 %v293_v16 }
  0x43   :  { %272 = vmatpush.msra.mxu3 %v239_v7  ;;  %309 = vmatpush.msrb.mxu0 %v292_v17 }
  0x44   :  { %403 = vmatpush.msrb.mxu1 %v292_v17 }
  0x45   :  { %273 = vmatpush.msra.mxu3 %v238_v8  ;;  %310 = vmatpush.msrb.mxu0 %v291_v20 }
  0x46   :  { %404 = vmatpush.msrb.mxu1 %v291_v20 }
  0x47   :  { %311 = vmatpush.msrb.mxu0 %v290_v22 }
  0x48   :  { %405 = vmatpush.msrb.mxu1 %v290_v22 }
  0x49   :  { %312 = vmatpush.msrb.mxu0 %v289_v23 }
  0x4a   :  { %406 = vmatpush.msrb.mxu1 %v289_v23 }
  0x4b   :  { %313 = vmatpush.msrb.mxu0 %v288_v27 }
  0x4c   :  { %407 = vmatpush.msrb.mxu1 %v288_v27 }
  0x4d   :  { %314 = vmatpush.msrb.mxu0 %v287_v31 }
  0x4e   :  { %408 = vmatpush.msrb.mxu1 %v287_v31 }
  0x4f   :  { %315 = vmatpush.msrb.mxu0 %v286_v33 }
  0x50   :  { %409 = vmatpush.msrb.mxu1 %v286_v33 }
  0x51   :  { %316 = vmatpush.msrb.mxu0 %v285_v39 }
  0x52   :  { %410 = vmatpush.msrb.mxu1 %v285_v39 }
  0x53   :  { %317 = vmatpush.msrb.mxu0 %v284_v40 }
  0x54   :  { %411 = vmatpush.msrb.mxu1 %v284_v40 }
  0x55   :  { %318 = vmatpush.msrb.mxu0 %v283_v41 }
  0x56   :  { %412 = vmatpush.msrb.mxu1 %v283_v41 }
  0xb1   :  { %v142_v60 = vpop.f32.mrf.mxu0 }
  0xb2   :  { %v143_v61 = vadd.f32 %v422_v59, %v142_v60 }
  0xb4   :  { %v148_v62 = vmax.f32 %v143_v61, 0.0 }
  0xb6   :  { %204 = vmatmul.f32.vlgmr.msra.gmra.mxu1 %v148_v62  ;;  %227 = vmatmul.f32.vlgmr.msra.gmra.mxu2 %v148_v62 }
  0xb9   :  { %v145_v63 = vpop.f32.mrf.mxu0 }
  0xba   :  { %v146_v0 = vadd.f32 %v422_v59, %v145_v63 }
  0xbc   :  { %v149_v1 = vmax.f32 %v146_v0, 0.0 }
  0xbe   :  { %207 = vmatmul.f32.gmra.mxu1 %v149_v1  ;;  %230 = vmatmul.f32.gmra.mxu2 %v149_v1 }
 0x133   :  { %v205_v18 = vpop.f32.mrf.mxu1 }
 0x134   :  { %v206_v19 = vadd.f32 %v205_v18, %v184_v15 }
 0x136   :  { %366 = vst [vmem:[%s704_s11] sm:$0xff] %v206_v19 }
 0x139   :  { %v228_v25 = vpop.f32.mrf.mxu2 }
 0x13a   :  { %v229_v26 = vadd.f32 %v228_v25, %v185_v21 }
 0x13b   :  { %v208_v28 = vpop.f32.mrf.mxu1 }
 0x13c   :  { %v234_v29 = vmul.f32 %v229_v26, %v103_v24  ;;  %367 = vst [vmem:[%s704_s11 + $0x8] sm:$0xff] %v229_v26  ;;  %v209_v30 = vadd.f32 %v208_v28, %v184_v15 }
 0x13e   :  { %368 = vst [vmem:[%s704_s11 + $0x10] sm:$0xff] %v209_v30  ;;  %v236_v32 = vadd.f32 %v234_v29, %v206_v19 }
 0x140   :  { %274 = vmatmul.f32.vlgmr.msra.gmra.mxu3 %v236_v32 }
 0x141   :  { %v231_v35 = vpop.f32.mrf.mxu2 }
 0x142   :  { %v232_v36 = vadd.f32 %v231_v35, %v185_v21 }
 0x144   :  { %v235_v37 = vmul.f32 %v232_v36, %v104_v34  ;;  %369 = vst [vmem:[%s704_s11 + $0x18] sm:$0xff] %v232_v36 }
 0x146   :  { %v237_v38 = vadd.f32 %v235_v37, %v209_v30 }
 0x148   :  { %277 = vmatmul.f32.gmra.mxu3 %v237_v38 }
 0x1c3   :  { %v275_v43 = vpop.f32.mrf.mxu3 }
 0x1c4   :  { %v276_v44 = vadd.f32 %v423_v42, %v275_v43 }
 0x1c6   :  { %v281_v45 = vmax.f32 %v276_v44, 0.0 }
 0x1c8   :  { %319 = vmatmul.f32.vlgmr.msrb.gmra.mxu0 %v281_v45 }
 0x1cb   :  { %v278_v46 = vpop.f32.mrf.mxu3 }
 0x1cc   :  { %v279_v47 = vadd.f32 %v423_v42, %v278_v46 }
 0x1ce   :  { %v282_v48 = vmax.f32 %v279_v47, 0.0 }
 0x1d0   :  { %322 = vmatmul.f32.vlgmr.msrb.gmra.mxu1 %v282_v48 }
 0x245   :  { %v320_v50 = vpop.f32.mrf.mxu0 }
 0x246   :  { %v321_v51 = vadd.f32 %v424_v49, %v320_v50 }
 0x248   :  { %v395_v52 = vmul.f32 -1.442695, %v321_v51 }
 0x24a   :  { %425 = vpow2.f32 %v395_v52 }
 0x24d   :  { %v323_v53 = vpop.f32.mrf.mxu1 }
 0x24e   :  { %v324_v54 = vadd.f32 %v424_v49, %v323_v53 }
 0x250   :  { %v426_v55 = vpop.eup %425  ;;  %v396_v56 = vmul.f32 -1.442695, %v324_v54 }
 0x251   :  { %v332_v57 = vadd.f32 1.0, %v426_v55 }
 0x252   :  { %427 = vpow2.f32 %v396_v56 }
 0x253   :  { %429 = vrcp.f32 %v332_v57  ;;  %v345_v63 = vand.u32 2147483648, %v332_v57  ;;  %v343_v1 = vand.u32 2147483647, %v332_v57  ;;  %vm339_vm1 = vweird.f32 %v332_v57 }
 0x255   :  { %v346_v4 = vor.u32 1.1754944e-38, %v345_v63  ;;  %vm344_vm3 = vcmp.eq.f32.partialorder %v343_v1, 8.507059e+37 }
 0x258   :  { %v428_v58 = vpop.eup %427 }
 0x259   :  { %v430_v59 = vpop.eup %429  ;;  %v333_v60 = vadd.f32 1.0, %v428_v58 }
 0x25a   :  { %v335_v61 = vmul.f32 %v430_v59, %v332_v57  ;;  %vm340_vm0 = vweird.f32 %v430_v59 }
 0x25b   :  { %431 = vrcp.f32 %v333_v60  ;;  %vm341_vm2 = vmor %vm339_vm1, %vm340_vm0  ;;  %v360_v9 = vand.u32 2147483648, %v333_v60  ;;  %v358_v11 = vand.u32 2147483647, %v333_v60  ;;  %vm354_vm5 = vweird.f32 %v333_v60 }
 0x25c   :  { %v336_v62 = vsub.f32 1.0, %v335_v61 }
 0x25d   :  { %v361_v13 = vor.u32 1.1754944e-38, %v360_v9  ;;  %vm359_vm7 = vcmp.eq.f32.partialorder %v358_v11, 8.507059e+37 }
 0x25e   :  { %v337_v0 = vmul.f32 %v430_v59, %v336_v62 }
 0x260   :  { %v338_v2 = vadd.f32 %v430_v59, %v337_v0 }
 0x261   :  { %v432_v3 = vpop.eup %431 }
 0x262   :  { %v350_v5 = vmul.f32 %v432_v3, %v333_v60  ;;  %v342_v6 = vsel %vm341_vm2, %v430_v59, %v338_v2  ;;  %vm355_vm4 = vweird.f32 %v432_v3 }
 0x263   :  { %v347_v7 = vsel %vm344_vm3, %v346_v4, %v342_v6  ;;  %vm356_vm6 = vmor %vm354_vm5, %vm355_vm4 }
 0x264   :  { %v351_v8 = vsub.f32 1.0, %v350_v5  ;;  %364 = vst [vmem:[#allocation10] sm:$0xff] %v347_v7 }
 0x266   :  { %v352_v10 = vmul.f32 %v432_v3, %v351_v8 }
 0x268   :  { %v353_v12 = vadd.f32 %v432_v3, %v352_v10 }
 0x26a   :  { %v357_v14 = vsel %vm356_vm6, %v432_v3, %v353_v12 }
 0x26b   :  { %v362_v15 = vsel %vm359_vm7, %v361_v13, %v357_v14 }
 0x26c   :  { %365 = vst [vmem:[#allocation10 + $0x8] sm:$0xff] %v362_v15 }
 0x26d   :  { %382 = dma.vmem_to_hbm [thread:$0]  %s375_s9, 256, %s377_s6, [#allocation4], %s565_s29, %s565_s29, %s566_s30  }
 0x26e   :  { %559 = dma.done.wait [#allocation4], 256  }
 0x26f   :  { %560 = vsyncadd [#allocation4], 4294967040 }
 0x270   :  { %391 = vsyncpa [#allocation3], 1 }
 0x271   :  { %392 = vsyncpa [#allocation6], 1 }
 0x272   :  { %393 = vsyncpa [#allocation9], 1 }
 0x273   :  { %394 = vsyncpa [#allocation4], 1 }

// kernel: vae_forward.1
= control target key start
LH: loop header
LB: loop body
LE: loop exit
PB: predicated region body
PF: predicated region fallthrough
CT: control target
= control target key end

     0   :  { %17 = vsyncpa [#allocation3], 0  ;;  %s693_s0 = inlined_call_operand.vmem [shape: f32[16,128], index: 0, kind: input, shape index: {}]   ;;  %s694_s1 = inlined_call_operand.vmem [shape: f32[16,128], index: 1, kind: input, shape index: {}]   ;;  %s695_s2 = inlined_call_operand.hbm [shape: f32[128,128], index: 2, kind: input, shape index: {}]   ;;  %s696_s3 = inlined_call_operand.vmem [shape: f32[1,128], index: 3, kind: input, shape index: {}]   ;;  %s697_s4 = inlined_call_operand.hbm [shape: f32[128,256], index: 4, kind: input, shape index: {}]   ;;  %s698_s5 = inlined_call_operand.vmem [shape: f32[1,256], index: 5, kind: input, shape index: {}]   ;;  %s699_s6 = inlined_call_operand.hbm [shape: f32[128,128], index: 6, kind: input, shape index: {}]   ;;  %s700_s7 = inlined_call_operand.vmem [shape: f32[1,128], index: 7, kind: input, shape index: {}]   ;;  %s701_s8 = inlined_call_operand.hbm [shape: f32[128,128], index: 8, kind: input, shape index: {}]   ;;  %s702_s9 = inlined_call_operand.vmem [shape: f32[1,128], index: 9, kind: input, shape index: {}]   ;;  %s703_s10 = inlined_call_operand.hbm [shape: f32[16,128], index: 10, kind: output, shape index: {0}]   ;;  %s704_s11 = inlined_call_operand.vmem [shape: f32[16,256], index: 11, kind: output, shape index: {1}]  }
   0x1   :  { %18 = vsyncpa [#allocation6], 0 }
   0x2   :  { %19 = vsyncpa [#allocation9], 0  ;;  %s44_s19 = sshll.u32 %s697_s4, 4  ;;  %s45_s19 = int_to_ptr.hbm [resolvable:$true] %s44_s19 }
   0x3   :  { %20 = vsyncpa [#allocation4], 0  ;;  %s561_s20 = smov [#allocation5]   ;;  %s29_s24 = sshll.u32 %s695_s2, 4  ;;  %s30_s24 = int_to_ptr.hbm [resolvable:$true] %s29_s24 }
   0x4   :  { %s46_s21 = sshll.u32 %s561_s20, 4  ;;  %s562_s25 = smov 256   ;;  %s47_s21 = int_to_ptr.vmem [resolvable:$true] %s46_s21 }
   0x5   :  { %s563_s26 = smov 16   ;;  %s564_s27 = smov [#allocation2]  }
   0x6   :  { %52 = dma.hbm_to_vmem [thread:$0]  %s45_s19, 4096, %s47_s21, [#allocation6], %s562_s25, %s562_s25, %s563_s26  }
   0x7   :  { %s31_s28 = sshll.u32 %s564_s27, 4  ;;  %s565_s29 = smov 128   ;;  %s32_s28 = int_to_ptr.vmem [resolvable:$true] %s31_s28 }
   0x8   :  { %s566_s30 = smov 8   ;;  %s59_s13 = sshll.u32 %s699_s6, 4  ;;  %s60_s13 = int_to_ptr.hbm [resolvable:$true] %s59_s13 }
   0x9   :  { %37 = dma.hbm_to_vmem [thread:$0]  %s30_s24, 2048, %s32_s28, [#allocation3], %s565_s29, %s565_s29, %s566_s30  }
   0xa   :  { %s567_s14 = smov [#allocation7]   ;;  %s74_s17 = sshll.u32 %s701_s8, 4  ;;  %s75_s17 = int_to_ptr.hbm [resolvable:$true] %s74_s17 }
   0xb   :  { %s61_s2 = sshll.u32 %s567_s14, 4  ;;  %s568_s18 = smov [#allocation8]   ;;  %s62_s2 = int_to_ptr.vmem [resolvable:$true] %s61_s2 }
   0xc   :  { %67 = dma.hbm_to_vmem [thread:$0]  %s60_s13, 2048, %s62_s2, [#allocation6], %s565_s29, %s565_s29, %s566_s30  }
   0xd   :  { %s76_s19 = sshll.u32 %s568_s18, 4  ;;  %s77_s19 = int_to_ptr.vmem [resolvable:$true] %s76_s19 }
   0xe   :  { %82 = dma.hbm_to_vmem [thread:$0]  %s75_s17, 2048, %s77_s19, [#allocation9], %s565_s29, %s565_s29, %s566_s30  }
   0xf   :  { %553 = dma.done.wait [#allocation3], 2048  }
  0x10   :  { %554 = vsyncadd [#allocation3], 4294965248 }
  0x11   :  { %555 = dma.done.wait [#allocation6], 6144  }
  0x12   :  { %556 = vsyncadd [#allocation6], 4294961152 }
  0x13   :  { %557 = dma.done.wait [#allocation9], 2048  }
  0x14   :  { %558 = vsyncadd [#allocation9], 4294965248  ;;  %v120_v0 = vld [vmem:[#allocation2 + $0x78] sm:$0xff]  ;;  %v119_v1 = vld [vmem:[#allocation2 + $0x70] sm:$0xff]  ;;  %s376_s6 = sshll.u32 %s703_s10, 4  ;;  %s377_s6 = int_to_ptr.hbm [resolvable:$true] %s376_s6 }
  0x15   :  { %125 = vmatpush.msra.mxu0 %v120_v0  ;;  %v118_v2 = vld [vmem:[#allocation2 + $0x68] sm:$0xff]  ;;  %v117_v3 = vld [vmem:[#allocation2 + $0x60] sm:$0xff]  ;;  %v116_v4 = vld [vmem:[#allocation2 + $0x58] sm:$0xff] }
  0x16   :  { %v115_v5 = vld [vmem:[#allocation2 + $0x50] sm:$0xff]  ;;  %v181_v7 = vld [vmem:[#allocation5 + $0xf8] sm:$0xff]  ;;  %v178_v8 = vld [vmem:[#allocation5 + $0xe0] sm:$0xff] }
  0x17   :  { %126 = vmatpush.msra.mxu0 %v119_v1  ;;  %v180_v6 = vld [vmem:[#allocation5 + $0xf0] sm:$0xff]  ;;  %v179_v9 = vld [vmem:[#allocation5 + $0xe8] sm:$0xff]  ;;  %211 = vmatpush.msra.mxu2 %v181_v7  ;;  %v177_v12 = vld [vmem:[#allocation5 + $0xd8] sm:$0xff] }
  0x18   :  { %188 = vmatpush.msra.mxu1 %v180_v6  ;;  %v114_v10 = vld [vmem:[#allocation2 + $0x48] sm:$0xff]  ;;  %v176_v11 = vld [vmem:[#allocation5 + $0xd0] sm:$0xff]  ;;  %v113_v13 = vld [vmem:[#allocation2 + $0x40] sm:$0xff] }
  0x19   :  { %127 = vmatpush.msra.mxu0 %v118_v2  ;;  %212 = vmatpush.msra.mxu2 %v179_v9  ;;  %v174_v14 = vld [vmem:[#allocation5 + $0xc0] sm:$0xff]  ;;  %v175_v15 = vld [vmem:[#allocation5 + $0xc8] sm:$0xff]  ;;  %v112_v16 = vld [vmem:[#allocation2 + $0x38] sm:$0xff] }
  0x1a   :  { %189 = vmatpush.msra.mxu1 %v178_v8  ;;  %v172_v17 = vld [vmem:[#allocation5 + $0xb0] sm:$0xff]  ;;  %v173_v18 = vld [vmem:[#allocation5 + $0xb8] sm:$0xff]  ;;  %v170_v20 = vld [vmem:[#allocation5 + $0xa0] sm:$0xff] }
  0x1b   :  { %128 = vmatpush.msra.mxu0 %v117_v3  ;;  %213 = vmatpush.msra.mxu2 %v177_v12  ;;  %v111_v19 = vld [vmem:[#allocation2 + $0x30] sm:$0xff]  ;;  %v171_v21 = vld [vmem:[#allocation5 + $0xa8] sm:$0xff]  ;;  %v169_v24 = vld [vmem:[#allocation5 + $0x98] sm:$0xff] }
  0x1c   :  { %190 = vmatpush.msra.mxu1 %v176_v11  ;;  %v110_v22 = vld [vmem:[#allocation2 + $0x28] sm:$0xff]  ;;  %v168_v23 = vld [vmem:[#allocation5 + $0x90] sm:$0xff]  ;;  %v109_v25 = vld [vmem:[#allocation2 + $0x20] sm:$0xff] }
  0x1d   :  { %129 = vmatpush.msra.mxu0 %v116_v4  ;;  %214 = vmatpush.msra.mxu2 %v175_v15  ;;  %v166_v26 = vld [vmem:[#allocation5 + $0x80] sm:$0xff]  ;;  %v167_v27 = vld [vmem:[#allocation5 + $0x88] sm:$0xff]  ;;  %v108_v28 = vld [vmem:[#allocation2 + $0x18] sm:$0xff] }
  0x1e   :  { %191 = vmatpush.msra.mxu1 %v174_v14  ;;  %v164_v29 = vld [vmem:[#allocation5 + $0x70] sm:$0xff]  ;;  %v165_v30 = vld [vmem:[#allocation5 + $0x78] sm:$0xff]  ;;  %v162_v32 = vld [vmem:[#allocation5 + $0x60] sm:$0xff] }
  0x1f   :  { %130 = vmatpush.msra.mxu0 %v115_v5  ;;  %215 = vmatpush.msra.mxu2 %v173_v18  ;;  %v107_v31 = vld [vmem:[#allocation2 + $0x10] sm:$0xff]  ;;  %v163_v33 = vld [vmem:[#allocation5 + $0x68] sm:$0xff]  ;;  %v161_v36 = vld [vmem:[#allocation5 + $0x58] sm:$0xff] }
  0x20   :  { %192 = vmatpush.msra.mxu1 %v172_v17  ;;  %v106_v34 = vld [vmem:[#allocation2 + $0x8] sm:$0xff]  ;;  %v160_v35 = vld [vmem:[#allocation5 + $0x50] sm:$0xff]  ;;  %v105_v37 = vld [vmem:[#allocation2] sm:$0xff] }
  0x21   :  { %131 = vmatpush.msra.mxu0 %v114_v10  ;;  %216 = vmatpush.msra.mxu2 %v171_v21  ;;  %v158_v38 = vld [vmem:[#allocation5 + $0x40] sm:$0xff]  ;;  %v159_v40 = vld [vmem:[#allocation5 + $0x48] sm:$0xff]  ;;  %v156_v41 = vld [vmem:[#allocation5 + $0x30] sm:$0xff] }
  0x22   :  { %193 = vmatpush.msra.mxu1 %v170_v20  ;;  %v101_v39 = vld [vmem:[%s693_s0] sm:$0xff]  ;;  %v157_v42 = vld [vmem:[#allocation5 + $0x38] sm:$0xff]  ;;  %v102_v43 = vld [vmem:[%s693_s0 + $0x8] sm:$0xff] }
  0x23   :  { %132 = vmatpush.msra.mxu0 %v113_v13  ;;  %217 = vmatpush.msra.mxu2 %v169_v24  ;;  %v154_v44 = vld [vmem:[#allocation5 + $0x20] sm:$0xff]  ;;  %v155_v45 = vld [vmem:[#allocation5 + $0x28] sm:$0xff]  ;;  %v152_v46 = vld [vmem:[#allocation5 + $0x10] sm:$0xff] }
  0x24   :  { %194 = vmatpush.msra.mxu1 %v168_v23  ;;  %v153_v47 = vld [vmem:[#allocation5 + $0x18] sm:$0xff]  ;;  %v150_v48 = vld [vmem:[#allocation5] sm:$0xff]  ;;  %v151_v49 = vld [vmem:[#allocation5 + $0x8] sm:$0xff] }
  0x25   :  { %133 = vmatpush.msra.mxu0 %v112_v16  ;;  %218 = vmatpush.msra.mxu2 %v167_v27  ;;  %v253_v50 = vld [vmem:[#allocation7 + $0x78] sm:$0xff]  ;;  %v252_v51 = vld [vmem:[#allocation7 + $0x70] sm:$0xff]  ;;  %v251_v52 = vld [vmem:[#allocation7 + $0x68] sm:$0xff] }
  0x26   :  { %195 = vmatpush.msra.mxu1 %v166_v26  ;;  %258 = vmatpush.msra.mxu3 %v253_v50  ;;  %v250_v53 = vld [vmem:[#allocation7 + $0x60] sm:$0xff]  ;;  %v249_v54 = vld [vmem:[#allocation7 + $0x58] sm:$0xff]  ;;  %v248_v55 = vld [vmem:[#allocation7 + $0x50] sm:$0xff] }
  0x27   :  { %134 = vmatpush.msra.mxu0 %v111_v19  ;;  %219 = vmatpush.msra.mxu2 %v165_v30  ;;  %v247_v56 = vld [vmem:[#allocation7 + $0x48] sm:$0xff]  ;;  %v246_v57 = vld [vmem:[#allocation7 + $0x40] sm:$0xff]  ;;  %v245_v58 = vld [vmem:[#allocation7 + $0x38] sm:$0xff] }
  0x28   :  { %196 = vmatpush.msra.mxu1 %v164_v29  ;;  %259 = vmatpush.msra.mxu3 %v252_v51  ;;  %v422_v59 = vld [vmem:[%s696_s3] ss:$0 sm:$0xff]  ;;  %v244_v2 = vld [vmem:[#allocation7 + $0x30] sm:$0xff]  ;;  %v243_v3 = vld [vmem:[#allocation7 + $0x28] sm:$0xff] }
  0x29   :  { %135 = vmatpush.msra.mxu0 %v110_v22  ;;  %220 = vmatpush.msra.mxu2 %v163_v33  ;;  %v242_v4 = vld [vmem:[#allocation7 + $0x20] sm:$0xff]  ;;  %v241_v5 = vld [vmem:[#allocation7 + $0x18] sm:$0xff]  ;;  %v240_v6 = vld [vmem:[#allocation7 + $0x10] sm:$0xff] }
  0x2a   :  { %197 = vmatpush.msra.mxu1 %v162_v32  ;;  %260 = vmatpush.msra.mxu3 %v251_v52  ;;  %v239_v7 = vld [vmem:[#allocation7 + $0x8] sm:$0xff]  ;;  %v238_v8 = vld [vmem:[#allocation7] sm:$0xff]  ;;  %v298_v9 = vld [vmem:[#allocation8 + $0x78] sm:$0xff] }
  0x2b   :  { %136 = vmatpush.msra.mxu0 %v109_v25  ;;  %221 = vmatpush.msra.mxu2 %v161_v36  ;;  %v297_v10 = vld [vmem:[#allocation8 + $0x70] sm:$0xff]  ;;  %v296_v11 = vld [vmem:[#allocation8 + $0x68] sm:$0xff]  ;;  %v295_v12 = vld [vmem:[#allocation8 + $0x60] sm:$0xff] }
  0x2c   :  { %198 = vmatpush.msra.mxu1 %v160_v35  ;;  %261 = vmatpush.msra.mxu3 %v250_v53  ;;  %v182_v13 = vld [vmem:[%s698_s5] sm:$0x3]  ;;  %v294_v14 = vld [vmem:[#allocation8 + $0x58] sm:$0xff]  ;;  %v293_v16 = vld [vmem:[#allocation8 + $0x50] sm:$0xff] }
  0x2d   :  { %137 = vmatpush.msra.mxu0 %v108_v28  ;;  %222 = vmatpush.msra.mxu2 %v159_v40  ;;  %v184_v15 = vperm.slane %v182_v13, 0  ;;  %v292_v17 = vld [vmem:[#allocation8 + $0x48] sm:$0xff]  ;;  %v291_v20 = vld [vmem:[#allocation8 + $0x40] sm:$0xff]  ;;  %v185_v21 = vperm.slane %v182_v13, 1  ;;  %v290_v22 = vld [vmem:[#allocation8 + $0x38] sm:$0xff] }
  0x2e   :  { %199 = vmatpush.msra.mxu1 %v158_v38  ;;  %262 = vmatpush.msra.mxu3 %v249_v54  ;;  %v289_v23 = vld [vmem:[#allocation8 + $0x30] sm:$0xff]  ;;  %v103_v24 = vld [vmem:[%s694_s1] sm:$0xff]  ;;  %v288_v27 = vld [vmem:[#allocation8 + $0x28] sm:$0xff] }
  0x2f   :  { %138 = vmatpush.msra.mxu0 %v107_v31  ;;  %223 = vmatpush.msra.mxu2 %v157_v42  ;;  %v287_v31 = vld [vmem:[#allocation8 + $0x20] sm:$0xff]  ;;  %v286_v33 = vld [vmem:[#allocation8 + $0x18] sm:$0xff]  ;;  %v284_v40 = vld [vmem:[#allocation8 + $0x8] sm:$0xff] }
  0x30   :  { %200 = vmatpush.msra.mxu1 %v156_v41  ;;  %263 = vmatpush.msra.mxu3 %v248_v55  ;;  %v283_v41 = vld [vmem:[#allocation8] sm:$0xff] }
  0x31   :  { %139 = vmatpush.msra.mxu0 %v106_v34  ;;  %224 = vmatpush.msra.mxu2 %v155_v45  ;;  %v104_v34 = vld [vmem:[%s694_s1 + $0x8] sm:$0xff]  ;;  %v423_v42 = vld [vmem:[%s700_s7] ss:$0 sm:$0xff]  ;;  %s569_s7 = smov [#allocation10]  }
  0x32   :  { %201 = vmatpush.msra.mxu1 %v154_v44  ;;  %264 = vmatpush.msra.mxu3 %v247_v56 }
  0x33   :  { %140 = vmatpush.msra.mxu0 %v105_v37  ;;  %225 = vmatpush.msra.mxu2 %v153_v47 }
  0x34   :  { %141 = vmatmul.f32.vlgmr.msra.gmra.mxu0 %v101_v39  ;;  %202 = vmatpush.msra.mxu1 %v152_v46  ;;  %v285_v39 = vld [vmem:[#allocation8 + $0x10] sm:$0xff] }
  0x35   :  { %226 = vmatpush.msra.mxu2 %v151_v49  ;;  %265 = vmatpush.msra.mxu3 %v246_v57  ;;  %v424_v49 = vld [vmem:[%s702_s9] ss:$0 sm:$0xff]  ;;  %s374_s9 = sshll.u32 %s569_s7, 4  ;;  %s375_s9 = int_to_ptr.vmem [resolvable:$true] %s374_s9 }
  0x36   :  { %203 = vmatpush.msra.mxu1 %v150_v48  ;;  %303 = vmatpush.msrb.mxu0 %v298_v9 }
  0x37   :  { %266 = vmatpush.msra.mxu3 %v245_v58 }
  0x38   :  { %397 = vmatpush.msrb.mxu1 %v298_v9  ;;  %304 = vmatpush.msrb.mxu0 %v297_v10 }
  0x39   :  { %267 = vmatpush.msra.mxu3 %v244_v2 }
  0x3a   :  { %398 = vmatpush.msrb.mxu1 %v297_v10  ;;  %305 = vmatpush.msrb.mxu0 %v296_v11 }
  0x3b   :  { %268 = vmatpush.msra.mxu3 %v243_v3 }
  0x3c   :  { %144 = vmatmul.f32.gmra.mxu0 %v102_v43  ;;  %399 = vmatpush.msrb.mxu1 %v296_v11 }
  0x3d   :  { %269 = vmatpush.msra.mxu3 %v242_v4  ;;  %306 = vmatpush.msrb.mxu0 %v295_v12 }
  0x3e   :  { %400 = vmatpush.msrb.mxu1 %v295_v12 }
  0x3f   :  { %270 = vmatpush.msra.mxu3 %v241_v5  ;;  %307 = vmatpush.msrb.mxu0 %v294_v14 }
  0x40   :  { %401 = vmatpush.msrb.mxu1 %v294_v14 }
  0x41   :  { %271 = vmatpush.msra.mxu3 %v240_v6  ;;  %308 = vmatpush.msrb.mxu0 %v293_v16 }
  0x42   :  { %402 = vmatpush.msrb.mxu1 %v293_v16 }
  0x43   :  { %272 = vmatpush.msra.mxu3 %v239_v7  ;;  %309 = vmatpush.msrb.mxu0 %v292_v17 }
  0x44   :  { %403 = vmatpush.msrb.mxu1 %v292_v17 }
  0x45   :  { %273 = vmatpush.msra.mxu3 %v238_v8  ;;  %310 = vmatpush.msrb.mxu0 %v291_v20 }
  0x46   :  { %404 = vmatpush.msrb.mxu1 %v291_v20 }
  0x47   :  { %311 = vmatpush.msrb.mxu0 %v290_v22 }
  0x48   :  { %405 = vmatpush.msrb.mxu1 %v290_v22 }
  0x49   :  { %312 = vmatpush.msrb.mxu0 %v289_v23 }
  0x4a   :  { %406 = vmatpush.msrb.mxu1 %v289_v23 }
  0x4b   :  { %313 = vmatpush.msrb.mxu0 %v288_v27 }
  0x4c   :  { %407 = vmatpush.msrb.mxu1 %v288_v27 }
  0x4d   :  { %314 = vmatpush.msrb.mxu0 %v287_v31 }
  0x4e   :  { %408 = vmatpush.msrb.mxu1 %v287_v31 }
  0x4f   :  { %315 = vmatpush.msrb.mxu0 %v286_v33 }
  0x50   :  { %409 = vmatpush.msrb.mxu1 %v286_v33 }
  0x51   :  { %316 = vmatpush.msrb.mxu0 %v285_v39 }
  0x52   :  { %410 = vmatpush.msrb.mxu1 %v285_v39 }
  0x53   :  { %317 = vmatpush.msrb.mxu0 %v284_v40 }
  0x54   :  { %411 = vmatpush.msrb.mxu1 %v284_v40 }
  0x55   :  { %318 = vmatpush.msrb.mxu0 %v283_v41 }
  0x56   :  { %412 = vmatpush.msrb.mxu1 %v283_v41 }
  0xb1   :  { %v142_v60 = vpop.f32.mrf.mxu0 }
  0xb2   :  { %v143_v61 = vadd.f32 %v422_v59, %v142_v60 }
  0xb4   :  { %v148_v62 = vmax.f32 %v143_v61, 0.0 }
  0xb6   :  { %204 = vmatmul.f32.vlgmr.msra.gmra.mxu1 %v148_v62  ;;  %227 = vmatmul.f32.vlgmr.msra.gmra.mxu2 %v148_v62 }
  0xb9   :  { %v145_v63 = vpop.f32.mrf.mxu0 }
  0xba   :  { %v146_v0 = vadd.f32 %v422_v59, %v145_v63 }
  0xbc   :  { %v149_v1 = vmax.f32 %v146_v0, 0.0 }
  0xbe   :  { %207 = vmatmul.f32.gmra.mxu1 %v149_v1  ;;  %230 = vmatmul.f32.gmra.mxu2 %v149_v1 }
 0x133   :  { %v205_v18 = vpop.f32.mrf.mxu1 }
 0x134   :  { %v206_v19 = vadd.f32 %v205_v18, %v184_v15 }
 0x136   :  { %366 = vst [vmem:[%s704_s11] sm:$0xff] %v206_v19 }
 0x139   :  { %v228_v25 = vpop.f32.mrf.mxu2 }
 0x13a   :  { %v229_v26 = vadd.f32 %v228_v25, %v185_v21 }
 0x13b   :  { %v208_v28 = vpop.f32.mrf.mxu1 }
 0x13c   :  { %v234_v29 = vmul.f32 %v229_v26, %v103_v24  ;;  %367 = vst [vmem:[%s704_s11 + $0x8] sm:$0xff] %v229_v26  ;;  %v209_v30 = vadd.f32 %v208_v28, %v184_v15 }
 0x13e   :  { %368 = vst [vmem:[%s704_s11 + $0x10] sm:$0xff] %v209_v30  ;;  %v236_v32 = vadd.f32 %v234_v29, %v206_v19 }
 0x140   :  { %274 = vmatmul.f32.vlgmr.msra.gmra.mxu3 %v236_v32 }
 0x141   :  { %v231_v35 = vpop.f32.mrf.mxu2 }
 0x142   :  { %v232_v36 = vadd.f32 %v231_v35, %v185_v21 }
 0x144   :  { %v235_v37 = vmul.f32 %v232_v36, %v104_v34  ;;  %369 = vst [vmem:[%s704_s11 + $0x18] sm:$0xff] %v232_v36 }
 0x146   :  { %v237_v38 = vadd.f32 %v235_v37, %v209_v30 }
 0x148   :  { %277 = vmatmul.f32.gmra.mxu3 %v237_v38 }
 0x1c3   :  { %v275_v43 = vpop.f32.mrf.mxu3 }
 0x1c4   :  { %v276_v44 = vadd.f32 %v423_v42, %v275_v43 }
 0x1c6   :  { %v281_v45 = vmax.f32 %v276_v44, 0.0 }
 0x1c8   :  { %319 = vmatmul.f32.vlgmr.msrb.gmra.mxu0 %v281_v45 }
 0x1cb   :  { %v278_v46 = vpop.f32.mrf.mxu3 }
 0x1cc   :  { %v279_v47 = vadd.f32 %v423_v42, %v278_v46 }
 0x1ce   :  { %v282_v48 = vmax.f32 %v279_v47, 0.0 }
 0x1d0   :  { %322 = vmatmul.f32.vlgmr.msrb.gmra.mxu1 %v282_v48 }
 0x245   :  { %v320_v50 = vpop.f32.mrf.mxu0 }
 0x246   :  { %v321_v51 = vadd.f32 %v424_v49, %v320_v50 }
 0x248   :  { %v395_v52 = vmul.f32 -1.442695, %v321_v51 }
 0x24a   :  { %425 = vpow2.f32 %v395_v52 }
 0x24d   :  { %v323_v53 = vpop.f32.mrf.mxu1 }
 0x24e   :  { %v324_v54 = vadd.f32 %v424_v49, %v323_v53 }
 0x250   :  { %v426_v55 = vpop.eup %425  ;;  %v396_v56 = vmul.f32 -1.442695, %v324_v54 }
 0x251   :  { %v332_v57 = vadd.f32 1.0, %v426_v55 }
 0x252   :  { %427 = vpow2.f32 %v396_v56 }
 0x253   :  { %429 = vrcp.f32 %v332_v57  ;;  %v345_v63 = vand.u32 2147483648, %v332_v57  ;;  %v343_v1 = vand.u32 2147483647, %v332_v57  ;;  %vm339_vm1 = vweird.f32 %v332_v57 }
 0x255   :  { %v346_v4 = vor.u32 1.1754944e-38, %v345_v63  ;;  %vm344_vm3 = vcmp.eq.f32.partialorder %v343_v1, 8.507059e+37 }
 0x258   :  { %v428_v58 = vpop.eup %427 }
 0x259   :  { %v430_v59 = vpop.eup %429  ;;  %v333_v60 = vadd.f32 1.0, %v428_v58 }
 0x25a   :  { %v335_v61 = vmul.f32 %v430_v59, %v332_v57  ;;  %vm340_vm0 = vweird.f32 %v430_v59 }
 0x25b   :  { %431 = vrcp.f32 %v333_v60  ;;  %vm341_vm2 = vmor %vm339_vm1, %vm340_vm0  ;;  %v360_v9 = vand.u32 2147483648, %v333_v60  ;;  %v358_v11 = vand.u32 2147483647, %v333_v60  ;;  %vm354_vm5 = vweird.f32 %v333_v60 }
 0x25c   :  { %v336_v62 = vsub.f32 1.0, %v335_v61 }
 0x25d   :  { %v361_v13 = vor.u32 1.1754944e-38, %v360_v9  ;;  %vm359_vm7 = vcmp.eq.f32.partialorder %v358_v11, 8.507059e+37 }
 0x25e   :  { %v337_v0 = vmul.f32 %v430_v59, %v336_v62 }
 0x260   :  { %v338_v2 = vadd.f32 %v430_v59, %v337_v0 }
 0x261   :  { %v432_v3 = vpop.eup %431 }
 0x262   :  { %v350_v5 = vmul.f32 %v432_v3, %v333_v60  ;;  %v342_v6 = vsel %vm341_vm2, %v430_v59, %v338_v2  ;;  %vm355_vm4 = vweird.f32 %v432_v3 }
 0x263   :  { %v347_v7 = vsel %vm344_vm3, %v346_v4, %v342_v6  ;;  %vm356_vm6 = vmor %vm354_vm5, %vm355_vm4 }
 0x264   :  { %v351_v8 = vsub.f32 1.0, %v350_v5  ;;  %364 = vst [vmem:[#allocation10] sm:$0xff] %v347_v7 }
 0x266   :  { %v352_v10 = vmul.f32 %v432_v3, %v351_v8 }
 0x268   :  { %v353_v12 = vadd.f32 %v432_v3, %v352_v10 }
 0x26a   :  { %v357_v14 = vsel %vm356_vm6, %v432_v3, %v353_v12 }
 0x26b   :  { %v362_v15 = vsel %vm359_vm7, %v361_v13, %v357_v14 }
 0x26c   :  { %365 = vst [vmem:[#allocation10 + $0x8] sm:$0xff] %v362_v15 }
 0x26d   :  { %382 = dma.vmem_to_hbm [thread:$0]  %s375_s9, 256, %s377_s6, [#allocation4], %s565_s29, %s565_s29, %s566_s30  }
 0x26e   :  { %559 = dma.done.wait [#allocation4], 256  }
 0x26f   :  { %560 = vsyncadd [#allocation4], 4294967040 }
 0x270   :  { %391 = vsyncpa [#allocation3], 1 }
 0x271   :  { %392 = vsyncpa [#allocation6], 1 }
 0x272   :  { %393 = vsyncpa [#allocation9], 1 }
 0x273   :  { %394 = vsyncpa [#allocation4], 1 }

</bundles_post_ra>
